<compile_context>
chip_gen: v5e
topology: v5e:2x2
jax: 0.10.0
libtpu: 0.0.40
codegen_flags: <defaults>
</compile_context>

<pallas_src>
import jax
import jax.numpy as jnp
from jax.experimental import pallas as pl
from jax.experimental.pallas import tpu as pltpu


def _embedding2d_kernel(idx_ref, wt_ref, o_ref):
    """weight.T @ one_hot(idx) for one lane-dense tile of TN positions.

    idx_ref: (1, TN)  int32   -- flattened (h*w*t) indices for this tile
    wt_ref:  (C, K)   float32 -- transposed embedding table (resident each step)
    o_ref:   (C, TN)  float32 -- gathered embeddings, positions along lanes
    """
    k = wt_ref.shape[1]
    tn = idx_ref.shape[1]
    idx = idx_ref[...]                                           # (1, TN)
    class_iota = jax.lax.broadcasted_iota(jnp.int32, (k, tn), 0)  # (K, TN)
    # NOTE: out-of-range / negative indices produce all-zero columns here
    # (PyTorch nn.Embedding would error); inputs are assumed in [0, K).
    one_hot = (class_iota == idx).astype(wt_ref.dtype)           # (K, TN)
    o_ref[...] = jnp.dot(wt_ref[...], one_hot,
                         preferred_element_type=jnp.float32)     # MXU matmul


def embedding2d_forward(inputs, weight, *, tile_n=512):
    """inputs: (B, H, W, T) int indices; weight: (K, C). Returns (B, C, H, W, T) f32."""
    b, h, w, t = inputs.shape
    k, c = weight.shape
    n = h * w * t                                   # positions per batch element

    # Lane-dense tiling: tile_n is a multiple of 128, clamped to the problem size.
    n128 = pl.cdiv(n, 128) * 128
    tile_n = min(tile_n, n128)
    n_pad = pl.cdiv(n128, tile_n) * tile_n

    # Flatten (h, w, t) row-major; batch kept as its own axis so no output
    # transpose is needed afterwards.
    flat_idx = inputs.reshape(b, 1, n).astype(jnp.int32)
    if n_pad != n:
        flat_idx = jnp.pad(flat_idx, ((0, 0), (0, 0), (0, n_pad - n)))

    weight_t = jnp.transpose(weight.astype(jnp.float32))          # (C, K)

    out = pl.pallas_call(
        _embedding2d_kernel,
        out_shape=jax.ShapeDtypeStruct((b, c, n_pad), jnp.float32),
        grid=(b, n_pad // tile_n),
        in_specs=[
            # (1, tile_n) lane-major index row; batch dim squeezed out.
            pl.BlockSpec((None, 1, tile_n), lambda bi, gi: (bi, 0, gi)),
            # Full transposed table, resident every step (tiny: K*C*4 bytes).
            pl.BlockSpec((c, k), lambda bi, gi: (0, 0)),
        ],
        out_specs=pl.BlockSpec((None, c, tile_n), lambda bi, gi: (bi, 0, gi)),
        compiler_params=pltpu.CompilerParams(
            dimension_semantics=("parallel", "parallel")),
    )(flat_idx, weight_t)

    if n_pad != n:
        out = out[:, :, :n]                     # drop padded positions
    return out.reshape(b, c, h, w, t)           # metadata-only reshape


if __name__ == "__main__":
    num_embeddings = 16
    embedding_dim = 32
    B, H, W, T = 2, 4, 4, 8

    key = jax.random.PRNGKey(0)
    w_key, x_key = jax.random.split(key)

    # Deterministic init matching nn.Parameter uniform_(-1/K, 1/K).
    weight = jax.random.uniform(
        w_key, (num_embeddings, embedding_dim), dtype=jnp.float32,
        minval=-1.0 / num_embeddings, maxval=1.0 / num_embeddings)
    inputs = jax.random.randint(
        x_key, (B, H, W, T), 0, num_embeddings, dtype=jnp.int32)

    out = jax.jit(embedding2d_forward)(inputs, weight)
    out = jax.block_until_ready(out)

    # Pure-JAX reference: out[b, c, h, w, t] = weight[inputs[b, h, w, t], c]
    ref = jnp.transpose(weight[inputs], (0, 4, 1, 2, 3))
    assert out.shape == (B, embedding_dim, H, W, T), out.shape
    assert out.dtype == jnp.float32
    assert jnp.allclose(out, ref, atol=1e-6), "mismatch vs reference"

    print("KERNEL_OK")
</pallas_src>

<mosaic_0001>
module attributes {stable_mosaic.version = 11 : i64} {
  func.func @_embedding2d_kernel(%arg0: i32, %arg1: i32, %arg2: memref<1x1x128xi32, #tpu.memory_space<vmem>>, %arg3: memref<32x16xf32, #tpu.memory_space<vmem>>, %arg4: memref<1x32x128xf32, #tpu.memory_space<vmem>>) attributes {dimension_semantics = [#tpu.dimension_semantics<parallel>, #tpu.dimension_semantics<parallel>], iteration_bounds = array<i64: 2, 1>, scalar_prefetch = 0 : i64, scratch_operands = 0 : i64, tpu.core_type = #tpu.core_type<tc>, window_params = [{transform_indices = @transform_0, window_bounds = array<i64: 1, 1, 128>}, {pipeline_mode = #tpu.pipeline_mode<synchronous>, transform_indices = @transform_1, window_bounds = array<i64: 32, 16>}, {transform_indices = @transform_2, window_bounds = array<i64: 1, 32, 128>}]} {
    %c0 = arith.constant 0 : index
    %c0_0 = arith.constant 0 : index
    %c0_1 = arith.constant 0 : index
    %0 = vector.load %arg2[%c0, %c0_0, %c0_1] : memref<1x1x128xi32, #tpu.memory_space<vmem>>, vector<1x1x128xi32>
    %1 = vector.shape_cast %0 : vector<1x1x128xi32> to vector<1x128xi32>
    %2 = tpu.iota {dimensions = array<i32: 0>} : vector<16x128xi32>
    %3 = vector.broadcast %1 : vector<1x128xi32> to vector<16x128xi32>
    %4 = arith.cmpi eq, %2, %3 : vector<16x128xi32>
    %5 = arith.extui %4 : vector<16x128xi1> to vector<16x128xi32>
    %6 = arith.sitofp %5 : vector<16x128xi32> to vector<16x128xf32>
    %c0_2 = arith.constant 0 : index
    %c0_3 = arith.constant 0 : index
    %7 = vector.load %arg3[%c0_2, %c0_3] : memref<32x16xf32, #tpu.memory_space<vmem>>, vector<32x16xf32>
    %cst = arith.constant dense<0.000000e+00> : vector<32x128xf32>
    %8 = tpu.matmul %7, %6, %cst {dimension_numbers = #tpu.dot_dimension_numbers<[1], [0], [0], [1], [0, 0, 1, 1], [], []>} : vector<32x16xf32>, vector<16x128xf32>, vector<32x128xf32> -> vector<32x128xf32>
    %c0_4 = arith.constant 0 : index
    %c0_5 = arith.constant 0 : index
    %c0_6 = arith.constant 0 : index
    %9 = vector.load %arg4[%c0_4, %c0_5, %c0_6] : memref<1x32x128xf32, #tpu.memory_space<vmem>>, vector<1x32x128xf32>
    %10 = vector.shape_cast %9 : vector<1x32x128xf32> to vector<32x128xf32>
    %11 = vector.shape_cast %8 : vector<32x128xf32> to vector<1x32x128xf32>
    tpu.vector_store %arg4[%c0_4, %c0_5, %c0_6], %11 {strides = array<i32>} : memref<1x32x128xf32, #tpu.memory_space<vmem>>, vector<1x32x128xf32>,
    return
  }
  func.func @transform_0(%arg0: i32, %arg1: i32) -> (i32, i32, i32) {
    %c0_i32 = arith.constant 0 : i32
    %c0_i32_0 = arith.constant 0 : i32
    return %arg0, %c0_i32, %arg1 : i32, i32, i32
  }
  func.func @transform_1(%arg0: i32, %arg1: i32) -> (i32, i32) {
    %c0_i32 = arith.constant 0 : i32
    %c0_i32_0 = arith.constant 0 : i32
    %c0_i32_1 = arith.constant 0 : i32
    return %c0_i32, %c0_i32_0 : i32, i32
  }
  func.func @transform_2(%arg0: i32, %arg1: i32) -> (i32, i32, i32) {
    %c0_i32 = arith.constant 0 : i32
    %c0_i32_0 = arith.constant 0 : i32
    return %arg0, %c0_i32, %arg1 : i32, i32, i32
  }
}

</mosaic_0001>

<bundles_post_ra>
// kernel: embedding2d_forward.1
= control target key start
LH: loop header
LB: loop body
LE: loop exit
PB: predicated region body
PF: predicated region fallthrough
CT: control target
= control target key end

     0   :  { %s397_s9 = smov 0   ;;  %s399_s10 = smov 0   ;;  %s446_s0 = inlined_call_operand.vmem [shape: s32[2,1,128], index: 0, kind: input, shape index: {}]   ;;  %s447_s1 = inlined_call_operand.vmem [shape: f32[32,16], index: 1, kind: input, shape index: {}]   ;;  %s448_s2 = inlined_call_operand.vmem [shape: f32[2,32,128], index: 2, kind: output, shape index: {}]  }
   0x1   :  { %s401_s11 = smov 0  }
   0x2 LB: > { %s24_s12 = sadd.s32 1, %s375_s10  ;;  %p311_p0 = scmp.ge.s32.totalorder %s379_s11, 1  ;;  %s379_s11 = sphi %s401_s11, %s12_s11   ;;  %s375_s10 = sphi %s399_s10, %s450_s10   ;;  %s371_s9 = sphi %s397_s9, %s449_s9  }
   0x3   : > { %p26_p1 = scmp.ge.s32.totalorder %s24_s12, 2  ;;  %p129_p2 = scmp.lt.s32.totalorder %s379_s11, 3 }
   0x5   : > { %s452_s12 = smov (%p26_p1, %s24_s12), 0  ;;  %p130_p3 = pnand %p311_p0, %p129_p2 }
   0x6   : > { %p155_p4 = scmp.lt.s32.totalorder (!%p130_p3), %s371_s9, 1 }
   0x7   : > { %133 = sbr.rel (%p130_p3) target bundleno = 156 (0x9c), region = 28 }
   0xc   : > { %v170_v0 = vlaneseq  ;;  %s454_s9 = smov (!%p155_p4, %s371_s9), 1  ;;  %v381_v4 = vmov 1.0   ;;  %v182_v5 = vld [vmem:[%s447_s1 + $0x10] sm:$0xff]  ;;  %vm184_vm2 = vcmask 130048   ;;  %v183_v6 = vld [vmem:[%s447_s1 + $0x18] sm:$0xff]  ;;  %v180_v7 = vld [vmem:[%s447_s1] sm:$0xff] }
   0xd   : > { %s160_s15 = scalar_lea.vmem %s446_s0, %s454_s9  ;;  %v181_v8 = vld [vmem:[%s447_s1 + $0x8] sm:$0xff]  ;;  %s324_s24 = sshll.u32 %s454_s9, 5 }
   0xe   : > { %v171_v1 = vshrl.u32 %v170_v0, 7  ;;  %v356_v3 = vld [vmem:[%s160_s15] ss:$0 sm:$0xff]  ;;  %s168_s27 = scalar_lea.vmem %s448_s2, %s324_s24 }
  0x10   : > { %v172_v2 = vadd.s32 8, %v171_v1  ;;  %vm174_vm1 = vcmp.eq.s32.totalorder %v171_v1, %v356_v3 }
  0x12   : > { %vm175_vm0 = vcmp.eq.s32.totalorder %v172_v2, %v356_v3 }
  0x13   : > { %326 = vmatpush.msk.msra.mxu2 %vm175_vm0, %v381_v4  ;;  %327 = vmatpush.msk.msra.mxu3 %vm175_vm0, %v381_v4 }
  0x14   : > { %316 = vmatpush.msk.msra.mxu0 %vm175_vm0, %v381_v4  ;;  %325 = vmatpush.msk.msra.mxu1 %vm175_vm0, %v381_v4 }
  0x15   : > { %329 = vmatpush.msk.msra.mxu2 %vm174_vm1, %v381_v4  ;;  %330 = vmatpush.msk.msra.mxu3 %vm174_vm1, %v381_v4 }
  0x16   : > { %320 = vmatmul.msk.f32.vlgmr.msra.gmra.mxu2 %vm184_vm2, %v182_v5  ;;  %321 = vmatmul.msk.f32.vlgmr.msra.gmra.mxu3 %vm184_vm2, %v183_v6 }
  0x17   : > { %317 = vmatpush.msk.msra.mxu0 %vm174_vm1, %v381_v4  ;;  %328 = vmatpush.msk.msra.mxu1 %vm174_vm1, %v381_v4 }
  0x18   : > { %318 = vmatmul.msk.f32.vlgmr.msra.gmra.mxu0 %vm184_vm2, %v180_v7  ;;  %319 = vmatmul.msk.f32.vlgmr.msra.gmra.mxu1 %vm184_vm2, %v181_v8 }
  0x95   : > { %v214_v9 = vpop.f32.mrf.mxu0  ;;  %v217_v10 = vpop.f32.mrf.mxu1 }
  0x96   : > { %226 = vst [vmem:[%s168_s27] sm:$0xff] %v214_v9 }
  0x97   : > { %227 = vst [vmem:[%s168_s27 + $0x8] sm:$0xff] %v217_v10 }
  0x99   : > { %v220_v11 = vpop.f32.mrf.mxu2  ;;  %v223_v12 = vpop.f32.mrf.mxu3 }
  0x9a   : > { %228 = vst [vmem:[%s168_s27 + $0x10] sm:$0xff] %v220_v11 }
  0x9b   : > { %229 = vst [vmem:[%s168_s27 + $0x18] sm:$0xff] %v223_v12 }
  0x9c PF: > { %s12_s11 = sadd.s32 1, %s379_s11   ;;  %s449_s9 = smov %s375_s10 }
  0x9d   : > { %p9_p5 = scmp.ge.s32.totalorder %s12_s11, 4   ;;  %s450_s10 = smov %s452_s12 }
  0x9f   :  { %11 = sbr.rel (!%p9_p5) target bundleno = 2 (0x2), region = 58 }

</bundles_post_ra>
